<compile_context>
chip_gen: v6e
topology: v6e:2x2x1
jax: 0.10.0
libtpu: 0.0.40
codegen_flags: <defaults>
</compile_context>

<pallas_src>
import functools
import math

import jax
import jax.numpy as jnp
from jax.experimental import pallas as pl
from jax.experimental.pallas import tpu as pltpu


def _attention_kernel(x_ref, w_ref, b_ref, o_ref, acc_ref, *,
                      hidden_dim, inv_scale):
    """One (row_tile, k_tile) grid step.

    The input-feature (K) axis is the last grid axis; partial QKV products are
    reduced into acc_ref, and the softmax / output store happen on the final
    K step only.
    """
    k_step = pl.program_id(1)

    @pl.when(k_step == 0)
    def _():
        acc_ref[...] = jnp.zeros_like(acc_ref)

    # Fused QKV projection: a single MXU pass with N = 3*H, f32 accumulation.
    acc_ref[...] += jnp.dot(
        x_ref[...], w_ref[...],
        preferred_element_type=jnp.float32,
        precision=jax.lax.Precision.HIGHEST)

    @pl.when(k_step == pl.num_programs(1) - 1)
    def _():
        qkv = acc_ref[...] + b_ref[...]                     # (TM, 3H), f32
        q = qkv[:, 0 * hidden_dim:1 * hidden_dim]
        k = qkv[:, 1 * hidden_dim:2 * hidden_dim]
        v = qkv[:, 2 * hidden_dim:3 * hidden_dim]

        scores = q * k * inv_scale                          # elementwise "attention"

        # softmax over the hidden dim, max-stabilized; exact divide (the
        # approx EUP reciprocal broke the tight numeric check).
        m = jnp.max(scores, axis=-1, keepdims=True)
        e = jnp.exp(scores - m)
        denom = jnp.sum(e, axis=-1, keepdims=True)
        weights = e / denom

        o_ref[...] = (weights * v).astype(o_ref.dtype)


def _vmem_budget_bytes():
    """Physical VMEM and the fraction of it we budget for kernel buffers."""
    try:
        info = pltpu.get_tpu_info()
        physical = int(getattr(info, "vmem_capacity_bytes", 0)) or (64 << 20)
    except Exception:
        physical = 64 << 20   # conservative (v7x per-core) if the query fails
    return physical, physical // 2


def _pick_k_tile(din, h, w_bytes, budget):
    """Largest K tile (full Din, or a multiple of 128 dividing Din) whose
    double-buffered weight block fits in ~1/3 of the VMEM budget."""
    full_cost = 2 * din * 3 * h * w_bytes
    if full_cost <= budget // 3 or din % 128 != 0:
        return din                       # no K tiling needed (or not legal)
    for tk in range(din - 128, 127, -128):
        if din % tk == 0 and 2 * tk * 3 * h * w_bytes <= budget // 3:
            return tk
    return 128


def _pick_row_tile(m, h, x_bytes, o_bytes, k_tile, w_bytes, budget):
    """Largest row tile that (a) divides M, (b) fits the VMEM budget with
    double-buffered x/out tiles + weight block + f32 accumulator, and
    (c) leaves >= 2 grid steps for megacore sharding when M is large."""
    per_row = 2 * k_tile * x_bytes + 2 * h * o_bytes + 3 * h * 4
    fixed = 2 * (k_tile * 3 * h * w_bytes) + 2 * (3 * h * 4)
    avail = max(budget - fixed, per_row * 8)
    max_rows = max(avail // per_row, 8)
    if m >= 1024:
        # Keep at least 2 row steps so the "parallel" axis can be split
        # across TensorCores on v7x; negligible overhead on 1-TC chips.
        max_rows = min(max_rows, m // 2)
    if m <= max_rows:
        return m                         # whole problem in one block
    t = (min(max_rows, m) // 8) * 8
    while t >= 8:
        if m % t == 0:
            return t
        t -= 8
    raise ValueError("B*S must be a multiple of 8 when it exceeds the VMEM row budget")


def attention_layer(x, wq, bq, wk, bk, wv, bv, *, row_tile=None, k_tile=None,
                    matmul_dtype=None):
    """x: (B, S, Din). Weights: (Din, H). Biases: (H,). Returns (B, S, H)."""
    B, S, Din = x.shape
    H = wq.shape[1]
    M = B * S

    x2d = x.reshape(M, Din)
    w_qkv = jnp.concatenate([wq, wk, wv], axis=1)                     # (Din, 3H)
    b_qkv = jnp.concatenate([bq, bk, bv]).reshape(1, 3 * H).astype(jnp.float32)
    if matmul_dtype is not None:
        # Cast once here (halves DMA bytes of a memory-bound kernel) instead
        # of a per-grid-step VPU cast inside the kernel.  Accumulation and
        # the softmax stay f32.
        x2d = x2d.astype(matmul_dtype)
        w_qkv = w_qkv.astype(matmul_dtype)

    x_bytes = jnp.dtype(x2d.dtype).itemsize
    w_bytes = jnp.dtype(w_qkv.dtype).itemsize
    o_bytes = jnp.dtype(x.dtype).itemsize

    physical_vmem, budget = _vmem_budget_bytes()
    if k_tile is None:
        k_tile = _pick_k_tile(Din, H, w_bytes, budget)
    assert Din % k_tile == 0, "k_tile must divide Din"
    if row_tile is None:
        row_tile = _pick_row_tile(M, H, x_bytes, o_bytes, k_tile, w_bytes, budget)
    assert M % row_tile == 0, "B*S must be divisible by row_tile"

    inv_scale = 1.0 / math.sqrt(float(H))                             # host-side

    kernel = functools.partial(_attention_kernel, hidden_dim=H,
                               inv_scale=inv_scale)

    cost = pl.CostEstimate(
        flops=2 * M * Din * 3 * H + 8 * M * H,
        transcendentals=M * H,
        bytes_accessed=(M * Din * x_bytes + Din * 3 * H * w_bytes
                        + 3 * H * 4 + M * H * o_bytes),
    )

    grid = (M // row_tile, Din // k_tile)

    out2d = pl.pallas_call(
        kernel,
        out_shape=jax.ShapeDtypeStruct((M, H), x.dtype),
        grid_spec=pltpu.PrefetchScalarGridSpec(
            num_scalar_prefetch=0,
            grid=grid,
            in_specs=[
                pl.BlockSpec((row_tile, k_tile), lambda i, k: (i, k)),   # x rows
                pl.BlockSpec((k_tile, 3 * H), lambda i, k: (k, 0)),      # fused W_qkv
                pl.BlockSpec((1, 3 * H), lambda i, k: (0, 0)),           # fused b_qkv
            ],
            out_specs=pl.BlockSpec((row_tile, H), lambda i, k: (i, 0)),
            scratch_shapes=[pltpu.VMEM((row_tile, 3 * H), jnp.float32)],
        ),
        compiler_params=pltpu.CompilerParams(
            dimension_semantics=("parallel", "arbitrary"),
            # Raise the scoped VMEM limit so the budget-derived tiles are
            # actually allowed (default scoped limit is only 16/32 MiB).
            vmem_limit_bytes=min(int(physical_vmem * 0.75), 128 << 20),
        ),
        cost_estimate=cost,
    )(x2d, w_qkv, b_qkv)

    return out2d.reshape(B, S, H)


def _reference(x, wq, bq, wk, bk, wv, bv):
    hp = jax.lax.Precision.HIGHEST
    q = jnp.dot(x, wq, precision=hp) + bq
    k = jnp.dot(x, wk, precision=hp) + bk
    v = jnp.dot(x, wv, precision=hp) + bv
    scale = jnp.sqrt(jnp.float32(wq.shape[1]))
    scores = q * k / scale
    weights = jax.nn.softmax(scores, axis=-1)
    return weights * v


if __name__ == "__main__":
    B, S, INPUT_DIM, HIDDEN_DIM = 2, 8, 32, 32

    key = jax.random.PRNGKey(0)
    kx, kq, kbq, kk, kbk, kv, kbv = jax.random.split(key, 7)

    # PyTorch-style init bound for nn.Linear: U(-1/sqrt(in), 1/sqrt(in))
    bound = 1.0 / (INPUT_DIM ** 0.5)
    x  = jax.random.normal(kx, (B, S, INPUT_DIM), dtype=jnp.float32)
    wq = jax.random.uniform(kq,  (INPUT_DIM, HIDDEN_DIM), jnp.float32, -bound, bound)
    bq = jax.random.uniform(kbq, (HIDDEN_DIM,),           jnp.float32, -bound, bound)
    wk = jax.random.uniform(kk,  (INPUT_DIM, HIDDEN_DIM), jnp.float32, -bound, bound)
    bk = jax.random.uniform(kbk, (HIDDEN_DIM,),           jnp.float32, -bound, bound)
    wv = jax.random.uniform(kv,  (INPUT_DIM, HIDDEN_DIM), jnp.float32, -bound, bound)
    bv = jax.random.uniform(kbv, (HIDDEN_DIM,),           jnp.float32, -bound, bound)

    out = attention_layer(x, wq, bq, wk, bk, wv, bv)
    out = jax.block_until_ready(out)

    ref = _reference(x, wq, bq, wk, bk, wv, bv)
    assert out.shape == (B, S, HIDDEN_DIM)
    assert jnp.allclose(out, ref, atol=1e-4, rtol=1e-3), "mismatch vs reference"

    print("KERNEL_OK")
</pallas_src>

<mosaic_0001>
module attributes {stable_mosaic.version = 11 : i64} {
  func.func @_attention_kernel(%arg0: i32, %arg1: i32, %arg2: memref<16x32xf32, #tpu.memory_space<vmem>>, %arg3: memref<32x96xf32, #tpu.memory_space<vmem>>, %arg4: memref<1x96xf32, #tpu.memory_space<vmem>>, %arg5: memref<16x32xf32, #tpu.memory_space<vmem>>, %arg6: memref<16x96xf32, #tpu.memory_space<vmem>>) attributes {dimension_semantics = [#tpu.dimension_semantics<parallel>, #tpu.dimension_semantics<arbitrary>], iteration_bounds = array<i64: 1, 1>, scalar_prefetch = 0 : i64, scratch_operands = 1 : i64, tpu.core_type = #tpu.core_type<tc>, window_params = [{transform_indices = @transform_0, window_bounds = array<i64: 16, 32>}, {transform_indices = @transform_1, window_bounds = array<i64: 32, 96>}, {pipeline_mode = #tpu.pipeline_mode<synchronous>, transform_indices = @transform_2, window_bounds = array<i64: 1, 96>}, {transform_indices = @transform_3, window_bounds = array<i64: 16, 32>}]} {
    %c0_i32 = arith.constant 0 : i32
    %0 = arith.cmpi eq, %arg1, %c0_i32 : i32
    %1 = arith.extui %0 : i1 to i32
    %c0_i32_0 = arith.constant 0 : i32
    %2 = arith.cmpi ne, %1, %c0_i32_0 : i32
    scf.if %2 {
      %cst_10 = arith.constant 0.000000e+00 : f32
      %12 = vector.broadcast %cst_10 : f32 to vector<16x96xf32>
      %c0_11 = arith.constant 0 : index
      %c0_12 = arith.constant 0 : index
      %13 = vector.load %arg6[%c0_11, %c0_12] : memref<16x96xf32, #tpu.memory_space<vmem>>, vector<16x96xf32>
      tpu.vector_store %arg6[%c0_11, %c0_12], %12 {strides = array<i32>} : memref<16x96xf32, #tpu.memory_space<vmem>>, vector<16x96xf32>,
    } else {
    }
    %c0 = arith.constant 0 : index
    %c0_1 = arith.constant 0 : index
    %3 = vector.load %arg6[%c0, %c0_1] : memref<16x96xf32, #tpu.memory_space<vmem>>, vector<16x96xf32>
    %c0_2 = arith.constant 0 : index
    %c0_3 = arith.constant 0 : index
    %4 = vector.load %arg2[%c0_2, %c0_3] : memref<16x32xf32, #tpu.memory_space<vmem>>, vector<16x32xf32>
    %c0_4 = arith.constant 0 : index
    %c0_5 = arith.constant 0 : index
    %5 = vector.load %arg3[%c0_4, %c0_5] : memref<32x96xf32, #tpu.memory_space<vmem>>, vector<32x96xf32>
    %cst = arith.constant dense<0.000000e+00> : vector<16x96xf32>
    %6 = tpu.matmul %4, %5, %cst {dimension_numbers = #tpu.dot_dimension_numbers<[1], [0], [0], [1], [0, 0, 1, 1], [], []>, precision = #tpu.contract_precision<fp32>} : vector<16x32xf32>, vector<32x96xf32>, vector<16x96xf32> -> vector<16x96xf32>
    %7 = arith.addf %3, %6 : vector<16x96xf32>
    %c0_6 = arith.constant 0 : index
    %c0_7 = arith.constant 0 : index
    %8 = vector.load %arg6[%c0_6, %c0_7] : memref<16x96xf32, #tpu.memory_space<vmem>>, vector<16x96xf32>
    tpu.vector_store %arg6[%c0_6, %c0_7], %7 {strides = array<i32>} : memref<16x96xf32, #tpu.memory_space<vmem>>, vector<16x96xf32>,
    %c0_i32_8 = arith.constant 0 : i32
    %9 = arith.cmpi eq, %arg1, %c0_i32_8 : i32
    %10 = arith.extui %9 : i1 to i32
    %c0_i32_9 = arith.constant 0 : i32
    %11 = arith.cmpi ne, %10, %c0_i32_9 : i32
    scf.if %11 {
      %c0_10 = arith.constant 0 : index
      %c0_11 = arith.constant 0 : index
      %12 = vector.load %arg6[%c0_10, %c0_11] : memref<16x96xf32, #tpu.memory_space<vmem>>, vector<16x96xf32>
      %c0_12 = arith.constant 0 : index
      %c0_13 = arith.constant 0 : index
      %13 = vector.load %arg4[%c0_12, %c0_13] : memref<1x96xf32, #tpu.memory_space<vmem>>, vector<1x96xf32>
      %14 = vector.broadcast %13 : vector<1x96xf32> to vector<16x96xf32>
      %15 = arith.addf %12, %14 : vector<16x96xf32>
      %16 = vector.extract_strided_slice %15 {offsets = [0, 0], sizes = [16, 32], strides = [1, 1]} : vector<16x96xf32> to vector<16x32xf32>
      %17 = vector.extract_strided_slice %15 {offsets = [0, 32], sizes = [16, 32], strides = [1, 1]} : vector<16x96xf32> to vector<16x32xf32>
      %18 = vector.extract_strided_slice %15 {offsets = [0, 64], sizes = [16, 32], strides = [1, 1]} : vector<16x96xf32> to vector<16x32xf32>
      %19 = arith.mulf %16, %17 : vector<16x32xf32>
      %cst_14 = arith.constant 0.176776692 : f32
      %20 = vector.broadcast %cst_14 : f32 to vector<16x32xf32>
      %21 = arith.mulf %19, %20 : vector<16x32xf32>
      %cst_15 = arith.constant dense<0xFF800000> : vector<16xf32>
      %22 = vector.multi_reduction <maximumf>, %21, %cst_15 [1] : vector<16x32xf32> to vector<16xf32>
      %23 = vector.shape_cast %22 : vector<16xf32> to vector<16x1xf32>
      %24 = vector.broadcast %23 : vector<16x1xf32> to vector<16x32xf32>
      %25 = arith.subf %21, %24 : vector<16x32xf32>
      %26 = math.exp %25 : vector<16x32xf32>
      %cst_16 = arith.constant dense<0.000000e+00> : vector<16xf32>
      %27 = vector.multi_reduction <add>, %26, %cst_16 [1] : vector<16x32xf32> to vector<16xf32>
      %28 = vector.shape_cast %27 : vector<16xf32> to vector<16x1xf32>
      %29 = vector.broadcast %28 : vector<16x1xf32> to vector<16x32xf32>
      %30 = arith.divf %26, %29 : vector<16x32xf32>
      %31 = arith.mulf %30, %18 : vector<16x32xf32>
      %c0_17 = arith.constant 0 : index
      %c0_18 = arith.constant 0 : index
      %32 = vector.load %arg5[%c0_17, %c0_18] : memref<16x32xf32, #tpu.memory_space<vmem>>, vector<16x32xf32>
      tpu.vector_store %arg5[%c0_17, %c0_18], %31 {strides = array<i32>} : memref<16x32xf32, #tpu.memory_space<vmem>>, vector<16x32xf32>,
    } else {
    }
    return
  }
  func.func @transform_0(%arg0: i32, %arg1: i32) -> (i32, i32) {
    %c0_i32 = arith.constant 0 : i32
    return %arg0, %arg1 : i32, i32
  }
  func.func @transform_1(%arg0: i32, %arg1: i32) -> (i32, i32) {
    %c0_i32 = arith.constant 0 : i32
    %c0_i32_0 = arith.constant 0 : i32
    return %arg1, %c0_i32 : i32, i32
  }
  func.func @transform_2(%arg0: i32, %arg1: i32) -> (i32, i32) {
    %c0_i32 = arith.constant 0 : i32
    %c0_i32_0 = arith.constant 0 : i32
    %c0_i32_1 = arith.constant 0 : i32
    return %c0_i32, %c0_i32_0 : i32, i32
  }
  func.func @transform_3(%arg0: i32, %arg1: i32) -> (i32, i32) {
    %c0_i32 = arith.constant 0 : i32
    %c0_i32_0 = arith.constant 0 : i32
    return %arg0, %c0_i32 : i32, i32
  }
}

</mosaic_0001>

<bundles_post_ra>
// kernel: tpu_custom_call.1
= control target key start
LH: loop header
LB: loop body
LE: loop exit
PB: predicated region body
PF: predicated region fallthrough
CT: control target
= control target key end

     0   :  { %8 = vsyncpa [#allocation4], 0  ;;  %s968_s0 = inlined_call_operand.hbm [shape: f32[16,32], index: 0, kind: input, shape index: {}]   ;;  %s969_s1 = inlined_call_operand.hbm [shape: f32[32,96], index: 1, kind: input, shape index: {}]   ;;  %s970_s2 = inlined_call_operand.vmem [shape: f32[1,96], index: 2, kind: input, shape index: {}]   ;;  %s971_s3 = inlined_call_operand.hbm [shape: f32[16,32], index: 3, kind: output, shape index: {}]  }
   0x1   :  { %9 = vsyncpa [#allocation7], 0 }
   0x2   :  { %10 = vsyncpa [#allocation5], 0  ;;  %s859_s12 = smov [#allocation3]  }
   0x3   :  { %s16_s13 = sshll.u32 %s859_s12, 4  ;;  %s17_s13 = int_to_ptr.vmem [resolvable:$true] %s16_s13 }
   0x4   :  { %s801_s14 = scalar_lea.vmem %s17_s13, 256  ;;  %p806_p1 = scmp.lt.s32.totalorder %s17_s13, %s17_s13 }
   0x5   :  { %p802_p0 = scmp.ne.s32.totalorder %s17_s13, %s801_s14  ;;  %p807_p2 = scmp.lt.s32.totalorder %s801_s14, %s801_s14 }
   0x7   :  { %p808_p3 = por %p807_p2, %p806_p1 }
   0x9   :  { %p809_p4 = pnand %p808_p3, %p802_p0 }
   0xb   :  { %812 = shalt.err (!%p809_p4)
}
   0xc   :  { %s860_s15 = smov 128   ;;  %s861_s16 = smov 8  }
   0xd   :  { %22 = dma.hbm_to_vmem [thread:$0]  %s968_s0, 256, %s17_s13, [#allocation4], %s860_s15, %s860_s15, %s861_s16  }
   0xe   :  { %s862_s19 = smov [#allocation6]  }
   0xf   :  { %s28_s20 = sshll.u32 %s862_s19, 4  ;;  %s29_s20 = int_to_ptr.vmem [resolvable:$true] %s28_s20 }
  0x10   :  { %s821_s21 = scalar_lea.vmem %s29_s20, 512  ;;  %p826_p6 = scmp.lt.s32.totalorder %s29_s20, %s29_s20 }
  0x11   :  { %p822_p5 = scmp.ne.s32.totalorder %s29_s20, %s821_s21  ;;  %p827_p7 = scmp.lt.s32.totalorder %s821_s21, %s821_s21 }
  0x13   :  { %p828_p8 = por %p827_p7, %p826_p6 }
  0x15   :  { %p829_p9 = pnand %p828_p8, %p822_p5 }
  0x17   :  { %832 = shalt.err (!%p829_p9)
}
  0x18   :  { %34 = dma.hbm_to_vmem [thread:$0]  %s969_s1, 512, %s29_s20, [#allocation7], %s860_s15, %s860_s15, %s861_s16  }
  0x19   :  { %853 = dma.done.wait [#allocation4], 256  }
  0x1a   :  { %854 = vsyncadd [#allocation4], 4294967040 }
  0x1b   :  { %855 = dma.done.wait [#allocation7], 512  }
  0x1c   :  { %856 = vsyncadd [#allocation7], 4294966784  ;;  %vm58_vm0 = vcmask 261120   ;;  %v57_v0 = vld [vmem:[#allocation6 + $0x18] sm:$0xff]  ;;  %v56_v1 = vld [vmem:[#allocation6 + $0x10] sm:$0xff]  ;;  %vm47_vm1 = vcmask 785408  }
  0x1d   :  { %v55_v2 = vld [vmem:[#allocation6 + $0x8] sm:$0xff]  ;;  %v899_v3 = vand.u32 4294901760, %v57_v0  ;;  %v901_v4 = vand.u32 4294901760, %v56_v1  ;;  %v54_v6 = vld [vmem:[#allocation6] sm:$0xff]  ;;  %v52_v7 = vld [vmem:[#allocation3] sm:$0xff]  ;;  %v863_v38 = vmov 0.0  }
  0x1e   :  { %v903_v5 = vand.u32 4294901760, %v55_v2  ;;  %v53_v8 = vld [vmem:[#allocation3 + $0x8] sm:$0xff]  ;;  %v905_v9 = vand.u32 4294901760, %v54_v6  ;;  %v60_v10 = vsel %vm58_vm0, %v52_v7, 0  ;;  %49 = vst.msk [vmem:[#allocation2 + $0x8] sm:$0xff] %vm47_vm1, %v863_v38  ;;  %48 = vst.msk [vmem:[#allocation2] sm:$0xff] %vm47_vm1, %v863_v38 }
  0x1f   :  { %v63_v11 = vsel %vm58_vm0, %v53_v8, 0  ;;  %711 = vmatprep.subr.mxu0 %v899_v3  ;;  %v180_v12 = vsub.f32 %v57_v0, %v899_v3  ;;  %v911_v13 = vand.u32 4294901760, %v60_v10  ;;  %v187_v14 = vsub.f32 %v56_v1, %v901_v4  ;;  %s864_s24 = smov 96   ;;  %s866_s25 = smov [#allocation8]  }
  0x20   :  { %v914_v15 = vand.u32 4294901760, %v63_v11  ;;  %712 = vmatpush3.msra.mxu0 %v899_v3  ;;  %v194_v16 = vsub.f32 %v55_v2, %v903_v5  ;;  %v201_v17 = vsub.f32 %v54_v6, %v905_v9  ;;  %v674_v2 = vld [vmem:[%s970_s2] ss:$0 sm:$0xff]  ;;  %s865_s2 = smov 64   ;;  %s661_s26 = sshll.u32 %s866_s25, 4  ;;  %s662_s26 = int_to_ptr.vmem [resolvable:$true] %s661_s26 }
  0x21   :  { %713 = vmatprep.subr.mxu0 %v901_v4  ;;  %v181_v18 = vand.u32 4294901760, %v180_v12  ;;  %v135_v19 = vsub.f32 %v60_v10, %v911_v13  ;;  %v188_v20 = vand.u32 4294901760, %v187_v14  ;;  %730 = vmatprep.mubr.f32.mxu1 %v911_v13  ;;  %s833_s27 = scalar_lea.vmem %s662_s26, 256  ;;  %p838_p11 = scmp.lt.s32.totalorder %s662_s26, %s662_s26 }
  0x22   :  { %v145_v21 = vsub.f32 %v63_v11, %v914_v15  ;;  %714 = vmatpush3.msra.mxu0 %v901_v4  ;;  %v195_v22 = vand.u32 4294901760, %v194_v16  ;;  %v202_v23 = vand.u32 4294901760, %v201_v17  ;;  %p834_p10 = scmp.ne.s32.totalorder %s662_s26, %s833_s27  ;;  %p839_p12 = scmp.lt.s32.totalorder %s833_s27, %s833_s27 }
  0x23   :  { %715 = vmatprep.subr.mxu0 %v903_v5  ;;  %v182_v24 = vsub.f32 %v180_v12, %v181_v18  ;;  %v136_v25 = vand.u32 4294901760, %v135_v19  ;;  %v189_v26 = vsub.f32 %v187_v14, %v188_v20 }
  0x24   :  { %v146_v27 = vand.u32 4294901760, %v145_v21  ;;  %716 = vmatpush3.msra.mxu0 %v903_v5  ;;  %v196_v28 = vsub.f32 %v194_v16, %v195_v22  ;;  %v203_v29 = vsub.f32 %v201_v17, %v202_v23  ;;  %p840_p13 = por %p839_p12, %p838_p11 }
  0x25   :  { %717 = vmatprep.subr.mxu0 %v905_v9  ;;  %v183_v30 = vand.u32 4294901760, %v182_v24  ;;  %v137_v31 = vsub.f32 %v135_v19, %v136_v25  ;;  %v190_v32 = vand.u32 4294901760, %v189_v26  ;;  %v51_v56 = vld [vmem:[#allocation2 + $0x8] sm:$0xff]  ;;  %v50_v60 = vld [vmem:[#allocation2] sm:$0xff] }
  0x26   :  { %v147_v33 = vsub.f32 %v145_v21, %v146_v27  ;;  %718 = vmatpush3.msra.mxu0 %v905_v9  ;;  %v197_v36 = vand.u32 4294901760, %v196_v28  ;;  %v204_v37 = vand.u32 4294901760, %v203_v29  ;;  %p841_p0 = pnand %p840_p13, %p834_p10 }
  0x27   :  { %722 = vmatprep.subr.mxu1 %v183_v30  ;;  %v138_v34 = vand.u32 4294901760, %v137_v31  ;;  %733 = vmatprep.subr.mxu0 %v180_v12 }
  0x28   :  { %v148_v35 = vand.u32 4294901760, %v147_v33  ;;  %723 = vmatpush3.msra.mxu1 %v183_v30 }
  0x29   :  { %719 = vmatprep.mubr.f32.mxu0 %v138_v34  ;;  %724 = vmatprep.subr.mxu1 %v190_v32 }
  0x2a   :  { %720 = vmatmul.mubr.f32.vlgmr.msra.gmra.mxu0 %v148_v35  ;;  %725 = vmatpush3.msra.mxu1 %v190_v32 }
  0x2b   :  { %734 = vmatpush3.msra.mxu0 %v180_v12  ;;  %726 = vmatprep.subr.mxu1 %v197_v36 }
  0x2c   :  { %735 = vmatprep.subr.mxu0 %v187_v14  ;;  %727 = vmatpush3.msra.mxu1 %v197_v36 }
  0x2d   :  { %736 = vmatpush3.msra.mxu0 %v187_v14  ;;  %728 = vmatprep.subr.mxu1 %v204_v37 }
  0x2e   :  { %737 = vmatprep.subr.mxu0 %v194_v16  ;;  %729 = vmatpush3.msra.mxu1 %v204_v37 }
  0x2f   :  { %738 = vmatpush3.msra.mxu0 %v194_v16  ;;  %731 = vmatmul.mubr.f32.vlgmr.msra.gmra.mxu1 %v914_v15 }
  0x30   :  { %739 = vmatprep.subr.mxu0 %v201_v17  ;;  %744 = vmatprep.subr.mxu1 %v899_v3 }
  0x31   :  { %740 = vmatpush3.msra.mxu0 %v201_v17  ;;  %741 = vmatprep.mubr.f32.mxu0 %v135_v19 }
  0x32   :  { %745 = vmatpush3.msra.mxu1 %v899_v3  ;;  %742 = vmatmul.mubr.f32.vlgmr.msra.gmra.mxu0 %v145_v21 }
  0x33   :  { %746 = vmatprep.subr.mxu1 %v901_v4  ;;  %755 = vmatprep.subr.mxu0 %v181_v18 }
  0x34   :  { %747 = vmatpush3.msra.mxu1 %v901_v4  ;;  %756 = vmatpush3.msra.mxu0 %v181_v18 }
  0x35   :  { %748 = vmatprep.subr.mxu1 %v903_v5  ;;  %757 = vmatprep.subr.mxu0 %v188_v20 }
  0x36   :  { %749 = vmatpush3.msra.mxu1 %v903_v5  ;;  %758 = vmatpush3.msra.mxu0 %v188_v20 }
  0x37   :  { %750 = vmatprep.subr.mxu1 %v905_v9  ;;  %759 = vmatprep.subr.mxu0 %v195_v22 }
  0x38   :  { %751 = vmatpush3.msra.mxu1 %v905_v9  ;;  %752 = vmatprep.mubr.f32.mxu1 %v136_v25 }
  0x39   :  { %760 = vmatpush3.msra.mxu0 %v195_v22  ;;  %753 = vmatmul.mubr.f32.vlgmr.msra.gmra.mxu1 %v146_v27 }
  0x3a   :  { %761 = vmatprep.subr.mxu0 %v202_v23  ;;  %766 = vmatprep.subr.mxu1 %v899_v3 }
  0x3b   :  { %762 = vmatpush3.msra.mxu0 %v202_v23  ;;  %763 = vmatprep.mubr.f32.mxu0 %v911_v13 }
  0x3c   :  { %767 = vmatpush3.msra.mxu1 %v899_v3  ;;  %764 = vmatmul.mubr.f32.vlgmr.msra.gmra.mxu0 %v914_v15 }
  0x3d   :  { %768 = vmatprep.subr.mxu1 %v901_v4  ;;  %774 = vmatprep.mubr.f32.mxu1 %v911_v13 }
  0x3e   :  { %769 = vmatpush3.msra.mxu1 %v901_v4 }
  0x3f   :  { %770 = vmatprep.subr.mxu1 %v903_v5 }
  0x40   :  { %771 = vmatpush3.msra.mxu1 %v903_v5 }
  0x41   :  { %772 = vmatprep.subr.mxu1 %v905_v9 }
  0x42   :  { %773 = vmatpush3.msra.mxu1 %v905_v9 }
  0x43   :  { %775 = vmatmul.mubr.f32.vlgmr.msra.gmra.mxu1 %v914_v15 }
  0xea   :  { %v721_v39 = vpop.f32.mrf.mxu0 }
  0xec   :  { %v140_v40 = vpop.f32.mrf.mxu0 }
  0xef   :  { %v732_v41 = vpop.f32.mrf.mxu1 }
  0xf0   :  { %v248_v44 = vadd.f32 %v732_v41, %v721_v39 }
  0xf1   :  { %v241_v42 = vpop.f32.mrf.mxu1 }
  0xf2   :  { %v743_v43 = vpop.f32.mrf.mxu0  ;;  %v242_v46 = vadd.f32 %v241_v42, %v140_v40 }
  0xf3   :  { %v335_v48 = vadd.f32 %v743_v43, %v248_v44 }
  0xf4   :  { %v327_v47 = vpop.f32.mrf.mxu0 }
  0xf5   :  { %v328_v51 = vadd.f32 %v327_v47, %v242_v46 }
  0xf9   :  { %v754_v45 = vpop.f32.mrf.mxu1 }
  0xfa   :  { %v420_v52 = vadd.f32 %v754_v45, %v335_v48 }
  0xfb   :  { %v411_v49 = vpop.f32.mrf.mxu1 }
  0xfc   :  { %v765_v50 = vpop.f32.mrf.mxu0  ;;  %v412_v53 = vadd.f32 %v411_v49, %v328_v51 }
  0xfd   :  { %v509_v55 = vadd.f32 %v765_v50, %v420_v52 }
  0xfe   :  { %v502_v54 = vpop.f32.mrf.mxu0 }
  0xff   :  { %v503_v58 = vadd.f32 %v502_v54, %v412_v53 }
 0x103   :  { %v776_v57 = vpop.f32.mrf.mxu1 }
 0x104   :  { %v590_v59 = vadd.f32 %v776_v57, %v509_v55 }
 0x105   :  { %v583_v61 = vpop.f32.mrf.mxu1 }
 0x106   :  { %v594_v62 = vadd.f32 %v590_v59, %v51_v56  ;;  %v584_v63 = vadd.f32 %v583_v61, %v503_v58 }
 0x108   :  { %597 = vst.msk [vmem:[#allocation2 + $0x8] sm:$0xff] %vm47_vm1, %v594_v62  ;;  %v593_v0 = vadd.f32 %v584_v63, %v50_v60 }
 0x10a   :  { %596 = vst.msk [vmem:[#allocation2] sm:$0xff] %vm47_vm1, %v593_v0 }
 0x10f   :  { %v602_v4 = vld [vmem:[#allocation2 + $0x8] sm:$0xff] }
 0x110   :  { %v611_v5 = vadd.f32 %v674_v2, %v602_v4 }
 0x111   :  { %v601_v1 = vld [vmem:[#allocation2] sm:$0xff] }
 0x112   :  { %v610_v3 = vadd.f32 %v674_v2, %v601_v1 }
 0x114   :  { %614 = vrot.lane.b32.xlu0 %v610_v3, %s864_s24 }
 0x118   :  { %616 = vrot.lane.b32.xlu0 %v611_v5, %s864_s24 }
 0x186   :  { %v615_v6 = vpop.permute.xlu0 %614 }
 0x187   :  { %v620_v7 = vmul.f32 %v615_v6, %v610_v3 }
 0x189   :  { %v622_v8 = vmul.f32 0.17677669, %v620_v7 }
 0x18a   :  { %v617_v9 = vpop.permute.xlu0 %616 }
 0x18b   :  { %v621_v10 = vmul.f32 %v617_v9, %v611_v5  ;;  %v624_v11 = vsel %vm58_vm0, %v622_v8, -inf }
 0x18c   :  { %625 = vmax.xlane.f32.xlu1 %v624_v11 }
 0x18d   :  { %v623_v12 = vmul.f32 0.17677669, %v621_v10 }
 0x18f   :  { %v627_v13 = vsel %vm58_vm0, %v623_v12, -inf }
 0x190   :  { %628 = vmax.xlane.f32.xlu1 %v627_v13 }
 0x215   :  { %v626_v14 = vpop.xlane.xlu1 %625 }
 0x216   :  { %v630_v15 = vsub.f32 %v622_v8, %v626_v14 }
 0x218   :  { %v632_v16 = vmul.f32 1.442695, %v630_v15 }
 0x219   :  { %v629_v17 = vpop.xlane.xlu1 %628 }
 0x21a   :  { %785 = vpow2.f32 %v632_v16  ;;  %v631_v18 = vsub.f32 %v623_v12, %v629_v17 }
 0x21c   :  { %v634_v19 = vmul.f32 1.442695, %v631_v18 }
 0x21e   :  { %787 = vpow2.f32 %v634_v19 }
 0x227   :  { %v786_v20 = vpop.eup %785 }
 0x228   :  { %v636_v21 = vsel %vm58_vm0, %v786_v20, 0.0 }
 0x229   :  { %637 = vadd.xlane.f32.xlu0 %v636_v21 }
 0x22b   :  { %v788_v22 = vpop.eup %787 }
 0x22c   :  { %v639_v23 = vsel %vm58_vm0, %v788_v22, 0.0 }
 0x22d   :  { %640 = vadd.xlane.f32.xlu1 %v639_v23 }
 0x23e   :  { %646 = vrot.lane.b32.xlu1 %v610_v3, %s865_s2 }
 0x242   :  { %648 = vrot.lane.b32.xlu1 %v611_v5, %s865_s2 }
 0x2b2   :  { %v638_v24 = vpop.xlane.xlu0 %637 }
 0x2b3   :  { %789 = vrcp.f32 %v638_v24 }
 0x2b6   :  { %v641_v25 = vpop.xlane.xlu1 %640 }
 0x2b7   :  { %791 = vrcp.f32 %v641_v25 }
 0x2ba   :  { %v647_v27 = vpop.permute.xlu1 %646 }
 0x2be   :  { %v649_v32 = vpop.permute.xlu1 %648 }
 0x2c0   :  { %v790_v26 = vpop.eup %789 }
 0x2c1   :  { %v643_v28 = vmul.f32 %v790_v26, %v786_v20 }
 0x2c3   :  { %v652_v29 = vmul.f32 %v647_v27, %v643_v28 }
 0x2c4   :  { %v792_v30 = vpop.eup %791 }
 0x2c5   :  { %654 = vst.msk [vmem:[#allocation8] sm:$0xff] %vm58_vm0, %v652_v29  ;;  %v645_v31 = vmul.f32 %v792_v30, %v788_v22 }
 0x2c7   :  { %v653_v33 = vmul.f32 %v649_v32, %v645_v31 }
 0x2c9   :  { %655 = vst.msk [vmem:[#allocation8 + $0x8] sm:$0xff] %vm58_vm0, %v653_v33 }
 0x2ca   :  { %844 = shalt.err (!%p841_p0)
}
 0x2cb   :  { %667 = dma.vmem_to_hbm [thread:$0]  %s662_s26, 256, %s971_s3, [#allocation5], %s860_s15, %s860_s15, %s861_s16  }
 0x2cc   :  { %857 = dma.done.wait [#allocation5], 256  }
 0x2cd   :  { %858 = vsyncadd [#allocation5], 4294967040 }
 0x2ce   :  { %671 = vsyncpa [#allocation4], 1 }
 0x2cf   :  { %672 = vsyncpa [#allocation7], 1 }
 0x2d0   :  { %673 = vsyncpa [#allocation5], 1 }

</bundles_post_ra>
